<compile_context>
chip_gen: v7x
topology: tpu7x:2x2x1
jax: 0.10.0
libtpu: 0.0.40
codegen_flags: <defaults>
</compile_context>

<pallas_src>
import numpy as np
import jax
import jax.numpy as jnp
from jax.experimental import pallas as pl
from jax.experimental.pallas import tpu as pltpu


# ------------------------------- kernel ---------------------------------- #
def _landmark_head_kernel(x_ref, w_ref, b_ref, o_ref):
    # x: (Cin, T) bf16   w: (Cout, Cin) bf16   b: (Cout, 1) f32   o: (Cout, T) f32
    acc = jnp.dot(w_ref[...], x_ref[...], preferred_element_type=jnp.float32)
    o_ref[...] = acc + b_ref[...]


def _pick_spatial_tile(hw):
    # Largest lane-dense (multiple-of-128) tile that divides HW; otherwise the
    # full extent (which is always a legal block shape).
    if hw % 128 != 0:
        return hw
    for cand in (2048, 1024, 512, 256, 128):
        if hw % cand == 0:
            return cand
    return hw


# ------------------------------- wrapper ---------------------------------- #
def landmark_head_forward(x_nchw, weight, bias, *, num_anchors=3):
    """x_nchw: (N, Cin, H, W); weight: (Cout, Cin); bias: (Cout,).

    Returns (N, H*W*num_anchors, 10), matching the PyTorch LandmarkHead.
    """
    n, c_in, h, w = x_nchw.shape
    c_out = weight.shape[0]
    assert c_out == num_anchors * 10
    hw = h * w
    tile = _pick_spatial_tile(hw)
    grid = (n, hw // tile)

    # bf16 MXU feed, f32 accumulate / bias.
    x_flat = x_nchw.reshape(n, c_in, hw).astype(jnp.bfloat16)
    w_bf = weight.astype(jnp.bfloat16)
    b_f32 = bias.reshape(c_out, 1).astype(jnp.float32)

    out = pl.pallas_call(
        _landmark_head_kernel,
        grid=grid,
        in_specs=[
            pl.BlockSpec((pl.Squeezed(), c_in, tile), lambda i, j: (i, 0, j)),
            pl.BlockSpec((c_out, c_in), lambda i, j: (0, 0)),
            pl.BlockSpec((c_out, 1), lambda i, j: (0, 0)),
        ],
        out_specs=pl.BlockSpec((pl.Squeezed(), c_out, tile), lambda i, j: (i, 0, j)),
        out_shape=jax.ShapeDtypeStruct((n, c_out, hw), jnp.float32),
        compiler_params=pltpu.CompilerParams(
            dimension_semantics=("parallel", "parallel")),
    )(x_flat, w_bf, b_f32)

    # (N, Cout, HW) -> (N, HW, Cout) -> (N, HW*num_anchors, 10)   [plain-JAX glue]
    out = jnp.transpose(out, (0, 2, 1))
    return out.reshape(n, hw * num_anchors, 10)


# ------------------------------ reference --------------------------------- #
def _ref_landmark_head(x_nchw, weight, bias, num_anchors=3):
    n, c_in, h, w = x_nchw.shape
    y = jnp.einsum("nchw,oc->nohw", x_nchw, weight) + bias[None, :, None, None]
    y = jnp.transpose(y, (0, 2, 3, 1))                 # permute(0,2,3,1)
    return y.reshape(n, -1, 10)                        # view(N, -1, 10)


# -------------------------------- main ------------------------------------ #
if __name__ == "__main__":
    key = jax.random.PRNGKey(0)
    N, IN_CHANNELS, NUM_ANCHORS = 2, 64, 3
    H, W = 16, 16
    C_OUT = NUM_ANCHORS * 10

    kx, kw, kb = jax.random.split(key, 3)
    x = jax.random.normal(kx, (N, IN_CHANNELS, H, W), jnp.float32)

    # PyTorch Conv2d default init: U(-1/sqrt(fan_in), 1/sqrt(fan_in)), fan_in = Cin*1*1
    s = 1.0 / np.sqrt(IN_CHANNELS)
    weight = jax.random.uniform(kw, (C_OUT, IN_CHANNELS), jnp.float32, -s, s)
    bias = jax.random.uniform(kb, (C_OUT,), jnp.float32, -s, s)

    fwd = jax.jit(lambda x: landmark_head_forward(x, weight, bias,
                                                  num_anchors=NUM_ANCHORS))
    out = jax.block_until_ready(fwd(x))

    assert out.shape == (N, H * W * NUM_ANCHORS, 10), out.shape

    ref = _ref_landmark_head(x, weight, bias, NUM_ANCHORS)
    # bf16 MXU inputs with f32 accumulation -> loose-ish tolerance.
    np.testing.assert_allclose(np.asarray(out), np.asarray(ref),
                               rtol=2e-2, atol=2e-2)

    print("KERNEL_OK")
</pallas_src>

<mosaic_0001>
module attributes {stable_mosaic.version = 11 : i64} {
  func.func @_landmark_head_kernel(%arg0: i32, %arg1: i32, %arg2: memref<1x64x256xbf16, #tpu.memory_space<vmem>>, %arg3: memref<30x64xbf16, #tpu.memory_space<vmem>>, %arg4: memref<30x1xf32, #tpu.memory_space<vmem>>, %arg5: memref<1x30x256xf32, #tpu.memory_space<vmem>>) attributes {dimension_semantics = [#tpu.dimension_semantics<parallel>, #tpu.dimension_semantics<parallel>], iteration_bounds = array<i64: 2, 1>, scalar_prefetch = 0 : i64, scratch_operands = 0 : i64, tpu.core_type = #tpu.core_type<tc>, window_params = [{transform_indices = @transform_0, window_bounds = array<i64: 1, 64, 256>}, {pipeline_mode = #tpu.pipeline_mode<synchronous>, transform_indices = @transform_1, window_bounds = array<i64: 30, 64>}, {pipeline_mode = #tpu.pipeline_mode<synchronous>, transform_indices = @transform_2, window_bounds = array<i64: 30, 1>}, {transform_indices = @transform_3, window_bounds = array<i64: 1, 30, 256>}]} {
    %c0 = arith.constant 0 : index
    %c0_0 = arith.constant 0 : index
    %0 = vector.load %arg3[%c0, %c0_0] : memref<30x64xbf16, #tpu.memory_space<vmem>>, vector<30x64xbf16>
    %c0_1 = arith.constant 0 : index
    %c0_2 = arith.constant 0 : index
    %c0_3 = arith.constant 0 : index
    %1 = vector.load %arg2[%c0_1, %c0_2, %c0_3] : memref<1x64x256xbf16, #tpu.memory_space<vmem>>, vector<1x64x256xbf16>
    %2 = vector.shape_cast %1 : vector<1x64x256xbf16> to vector<64x256xbf16>
    %cst = arith.constant dense<0.000000e+00> : vector<30x256xf32>
    %3 = tpu.matmul %0, %2, %cst {dimension_numbers = #tpu.dot_dimension_numbers<[1], [0], [0], [1], [0, 0, 1, 1], [], []>} : vector<30x64xbf16>, vector<64x256xbf16>, vector<30x256xf32> -> vector<30x256xf32>
    %c0_4 = arith.constant 0 : index
    %c0_5 = arith.constant 0 : index
    %4 = vector.load %arg4[%c0_4, %c0_5] : memref<30x1xf32, #tpu.memory_space<vmem>>, vector<30x1xf32>
    %5 = vector.broadcast %4 : vector<30x1xf32> to vector<30x256xf32>
    %6 = arith.addf %3, %5 : vector<30x256xf32>
    %c0_6 = arith.constant 0 : index
    %c0_7 = arith.constant 0 : index
    %c0_8 = arith.constant 0 : index
    %7 = vector.load %arg5[%c0_6, %c0_7, %c0_8] : memref<1x30x256xf32, #tpu.memory_space<vmem>>, vector<1x30x256xf32>
    %8 = vector.shape_cast %7 : vector<1x30x256xf32> to vector<30x256xf32>
    %9 = vector.shape_cast %6 : vector<30x256xf32> to vector<1x30x256xf32>
    tpu.vector_store %arg5[%c0_6, %c0_7, %c0_8], %9 {strides = array<i32>} : memref<1x30x256xf32, #tpu.memory_space<vmem>>, vector<1x30x256xf32>,
    return
  }
  func.func @transform_0(%arg0: i32, %arg1: i32) -> (i32, i32, i32) {
    %c0_i32 = arith.constant 0 : i32
    %c0_i32_0 = arith.constant 0 : i32
    return %arg0, %c0_i32, %arg1 : i32, i32, i32
  }
  func.func @transform_1(%arg0: i32, %arg1: i32) -> (i32, i32) {
    %c0_i32 = arith.constant 0 : i32
    %c0_i32_0 = arith.constant 0 : i32
    %c0_i32_1 = arith.constant 0 : i32
    return %c0_i32, %c0_i32_0 : i32, i32
  }
  func.func @transform_2(%arg0: i32, %arg1: i32) -> (i32, i32) {
    %c0_i32 = arith.constant 0 : i32
    %c0_i32_0 = arith.constant 0 : i32
    %c0_i32_1 = arith.constant 0 : i32
    return %c0_i32, %c0_i32_0 : i32, i32
  }
  func.func @transform_3(%arg0: i32, %arg1: i32) -> (i32, i32, i32) {
    %c0_i32 = arith.constant 0 : i32
    %c0_i32_0 = arith.constant 0 : i32
    return %arg0, %c0_i32, %arg1 : i32, i32, i32
  }
}

</mosaic_0001>

<bundles_post_ra>
// kernel: _lambda_.1
= control target key start
LH: loop header
LB: loop body
LE: loop exit
PB: predicated region body
PF: predicated region fallthrough
CT: control target
= control target key end

     0   :  { %s571_s12 = smov 0   ;;  %s573_s13 = smov 0   ;;  %s629_s0 = inlined_call_operand.vmem [shape: bf16[2,64,256], index: 0, kind: input, shape index: {}]   ;;  %s630_s1 = inlined_call_operand.vmem [shape: bf16[30,64], index: 1, kind: input, shape index: {}]   ;;  %s631_s2 = inlined_call_operand.vmem [shape: f32[30,1], index: 2, kind: input, shape index: {}]   ;;  %s632_s3 = inlined_call_operand.vmem [shape: f32[2,30,256], index: 3, kind: output, shape index: {}]  }
   0x1   :  { %s575_s14 = smov 0  }
   0x2 LB: > { %s25_s15 = sadd.s32 1, %s544_s13  ;;  %p456_p0 = scmp.ge.s32.totalorder %s548_s14, 1  ;;  %s548_s14 = sphi %s575_s14, %s13_s14   ;;  %s544_s13 = sphi %s573_s13, %s634_s13   ;;  %s540_s12 = sphi %s571_s12, %s633_s12  }
   0x3   : > { %p27_p1 = scmp.ge.s32.totalorder %s25_s15, 2  ;;  %p158_p2 = scmp.lt.s32.totalorder %s548_s14, 3 }
   0x5   : > { %s636_s15 = smov (%p27_p1, %s25_s15), 0  ;;  %p159_p3 = pnand %p456_p0, %p158_p2 }
   0x6   : > { %p191_p4 = scmp.lt.s32.totalorder (!%p159_p3), %s540_s12, 1  ;;  %v550_v0 = vmov (!%p159_p3), 0   ;;  %v225_v1 = vld [vmem:[%s631_s2 + $0x10] sm:$0xff] (!%p159_p3)  ;;  %v223_v2 = vld [vmem:[%s631_s2] sm:$0xff] (!%p159_p3)  ;;  %v226_v3 = vld [vmem:[%s631_s2 + $0x18] sm:$0x3f] (!%p159_p3) }
   0x7   : > { %162 = sbr.rel (%p159_p3) target bundleno = 252 (0xfc), region = 32  ;;  %336 = vmatprep.mubr.bf16.mxu0 (!%p159_p3), %v550_v0  ;;  %346 = vmatprep.mubr.bf16.mxu1 (!%p159_p3), %v550_v0  ;;  %v224_v4 = vld [vmem:[%s631_s2 + $0x8] sm:$0xff] (!%p159_p3)  ;;  %v524_v13 = vld [vmem:[%s630_s1] sm:$0xff] (!%p159_p3)   ;;  %vm297_vm0 = vcmask (!%p159_p3), 523264  }
   0x8   : > { %511 = vset.pattern.permute.xlu1 (!%p159_p3), %v550_v0  ;;  %510 = vset.pattern.permute.xlu0 (!%p159_p3), %v550_v0  ;;  %v525_v14 = vld [vmem:[%s630_s1 + $0x8] sm:$0x7f] (!%p159_p3)  }
   0x9   : > { %239 = vperm.xlu1 (!%p159_p3), %511, %v225_v1   ;;  %229 = vperm.xlu0 (!%p159_p3), %510, %v223_v2  }
   0xd   : > { %244 = vperm.xlu1 (!%p159_p3), %511, %v226_v3   ;;  %234 = vperm.xlu0 (!%p159_p3), %510, %v224_v4  }
   0xe   : > { %s638_s12 = smov (!%p191_p4, %s540_s12), 1 }
   0xf   : > { %s475_s20 = sshll.u32 %s638_s12, 6 }
  0x10   : > { %s198_s27 = scalar_lea.vmem %s629_s0, %s475_s20  ;;  %s208_s7 = scalar_lea.vmem %s632_s3, %s475_s20 }
  0x11   : > { %v512_v5 = vld [vmem:[%s198_s27 + $0x4] ss:$8 sps:$4 sm:$0xff]   ;;  %v514_v6 = vld [vmem:[%s198_s27] ss:$8 sps:$4 sm:$0xff]   ;;  %v515_v7 = vld [vmem:[%s198_s27 + $0x14] ss:$8 sps:$4 sm:$0xff]  }
  0x12   : > { %304 = vmatprep.subr.bf16.mxu0 %v512_v5  ;;  %477 = vmatprep.subr.bf16.mxu1 %v512_v5  ;;  %v517_v8 = vld [vmem:[%s198_s27 + $0x10] ss:$8 sps:$4 sm:$0xff]   ;;  %v518_v9 = vld [vmem:[%s198_s27 + $0x24] ss:$8 sps:$4 sm:$0xff]   ;;  %v520_v10 = vld [vmem:[%s198_s27 + $0x20] ss:$8 sps:$4 sm:$0xff]  }
  0x13   : > { %305 = vmatpush1.bf16.msra.mxu0 %v514_v6  ;;  %481 = vmatpush1.bf16.msra.mxu1 %v514_v6  ;;  %v521_v11 = vld [vmem:[%s198_s27 + $0x34] ss:$8 sps:$4 sm:$0xff]   ;;  %v523_v12 = vld [vmem:[%s198_s27 + $0x30] ss:$8 sps:$4 sm:$0xff]  }
  0x14   : > { %306 = vmatprep.subr.bf16.mxu0 %v515_v7  ;;  %478 = vmatprep.subr.bf16.mxu1 %v515_v7 }
  0x17   : > { %307 = vmatpush1.bf16.msra.mxu0 %v517_v8  ;;  %482 = vmatpush1.bf16.msra.mxu1 %v517_v8 }
  0x18   : > { %308 = vmatprep.subr.bf16.mxu0 %v518_v9  ;;  %479 = vmatprep.subr.bf16.mxu1 %v518_v9 }
  0x1b   : > { %309 = vmatpush1.bf16.msra.mxu0 %v520_v10  ;;  %483 = vmatpush1.bf16.msra.mxu1 %v520_v10 }
  0x1c   : > { %310 = vmatprep.subr.bf16.mxu0 %v521_v11  ;;  %480 = vmatprep.subr.bf16.mxu1 %v521_v11 }
  0x1f   : > { %311 = vmatpush1.bf16.msra.mxu0 %v523_v12  ;;  %484 = vmatpush1.bf16.msra.mxu1 %v523_v12 }
  0x22   : > { %471 = vmatmul.mubr.msk.bf16.vlgmr.msra.gmra.mrb[0].mxu0 %vm297_vm0, %v524_v13  ;;  %472 = vmatmul.mubr.msk.bf16.vlgmr.msra.gmra.mrb[0].mxu1 %vm297_vm0, %v525_v14 }
  0x88   : > { %v240_v15 = vpop.permute.xlu1 %239  ;;  %v230_v16 = vpop.permute.xlu0 %229 }
  0x8c   : > { %v245_v17 = vpop.permute.xlu1 %244  ;;  %v235_v18 = vpop.permute.xlu0 %234 }
  0xf5   : > { %v338_v19 = vpop.f32.mrb[0].mxu0  ;;  %v348_v20 = vpop.f32.mrb[0].mxu1 }
  0xf6   : > { %v339_v21 = vadd.f32 %v338_v19, %v230_v16  ;;  %v349_v22 = vadd.f32 %v348_v20, %v240_v15  ;;  %v340_v23 = vpop.f32.mrb[1].mxu0  ;;  %v350_v24 = vpop.f32.mrb[1].mxu1 }
  0xf7   : > { %v341_v25 = vadd.f32 %v340_v23, %v230_v16  ;;  %v351_v26 = vadd.f32 %v350_v24, %v240_v15  ;;  %v342_v27 = vpop.f32.mrb[2].mxu0  ;;  %v352_v28 = vpop.f32.mrb[2].mxu1 }
  0xf8   : > { %357 = vst [vmem:[%s208_s7] sm:$0xff] %v339_v21  ;;  %361 = vst [vmem:[%s208_s7 + $0x20] sm:$0xff] %v349_v22  ;;  %v343_v29 = vadd.f32 %v342_v27, %v235_v18  ;;  %v353_v30 = vadd.f32 %v352_v28, %v245_v17  ;;  %v344_v31 = vpop.f32.mrb[3].mxu0  ;;  %v354_v32 = vpop.f32.mrb[3].mxu1 }
  0xf9   : > { %358 = vst [vmem:[%s208_s7 + $0x8] sm:$0xff] %v341_v25  ;;  %362 = vst [vmem:[%s208_s7 + $0x28] sm:$0xff] %v351_v26  ;;  %v345_v33 = vadd.f32 %v344_v31, %v235_v18  ;;  %v355_v34 = vadd.f32 %v354_v32, %v245_v17 }
  0xfa   : > { %359 = vst [vmem:[%s208_s7 + $0x10] sm:$0xff] %v343_v29  ;;  %363 = vst [vmem:[%s208_s7 + $0x30] sm:$0x3f] %v353_v30 }
  0xfb   : > { %360 = vst [vmem:[%s208_s7 + $0x18] sm:$0xff] %v345_v33  ;;  %364 = vst [vmem:[%s208_s7 + $0x38] sm:$0x3f] %v355_v34 }
  0xfc PF: > { %s13_s14 = sadd.s32 1, %s548_s14   ;;  %s633_s12 = smov %s544_s13 }
  0xfd   : > { %p10_p5 = scmp.ge.s32.totalorder %s13_s14, 4   ;;  %s634_s13 = smov %s636_s15 }
  0xff   :  { %12 = sbr.rel (!%p10_p5) target bundleno = 2 (0x2), region = 62 }

</bundles_post_ra>
